<compile_context>
chip_gen: v7x
topology: tpu7x:2x2x1
jax: 0.10.0
libtpu: 0.0.40
codegen_flags: <defaults>
</compile_context>

<pallas_src>
import math

import jax
import jax.numpy as jnp
from jax.experimental import pallas as pl
from jax.experimental.pallas import tpu as pltpu

_NEG_INF = -1e30
_VMEM_LIMIT = 48 * 1024 * 1024   # fits v7x (64 MiB physical) with headroom


def _round_up(x, m):
    return (x + m - 1) // m * m


# ---------------------------------------------------------------------------
# Fused linear: out = x @ W (+ b) (+ residual), whole weight panel resident in
# VMEM, bf16 MXU inputs, f32 accumulation.  Grid iterates over M tiles only.
# ---------------------------------------------------------------------------
def _linear_kernel(x_ref, w_ref, b_ref, o_ref):
    acc = jnp.dot(x_ref[...].astype(jnp.bfloat16), w_ref[...],
                  preferred_element_type=jnp.float32)
    o_ref[...] = (acc + b_ref[...]).astype(o_ref.dtype)


def _linear_res_kernel(x_ref, w_ref, b_ref, r_ref, o_ref):
    acc = jnp.dot(x_ref[...].astype(jnp.bfloat16), w_ref[...],
                  preferred_element_type=jnp.float32)
    o_ref[...] = (acc + b_ref[...] + r_ref[...].astype(jnp.float32)
                  ).astype(o_ref.dtype)


def linear_fused(x, wp, bp, n_out, residual=None, out_dtype=jnp.float32):
    """x: (M, K) f32/bf16.  wp: (Kp, Np) bf16, pre-transposed+padded weight.
    bp: (1, Np) f32 bias (zeros when the layer has no bias).
    residual: (M, n_out) or None.  Returns (M, n_out) in out_dtype."""
    M, K = x.shape
    Kp, Np = wp.shape

    tm = min(256, _round_up(M, 8))
    Mp = _round_up(M, tm)

    xp = x
    if (Mp, Kp) != (M, K):
        xp = jnp.pad(x, ((0, Mp - M), (0, Kp - K)))

    in_specs = [
        pl.BlockSpec((tm, Kp), lambda i: (i, 0)),    # x tile, streams over M
        pl.BlockSpec((Kp, Np), lambda i: (0, 0)),    # weight: resident in VMEM
        pl.BlockSpec((1, Np), lambda i: (0, 0)),     # bias:   resident in VMEM
    ]
    args = [xp, wp, bp]
    kernel = _linear_kernel
    if residual is not None:
        rp = residual
        if (Mp, Np) != residual.shape:
            rp = jnp.pad(residual, ((0, Mp - M), (0, Np - n_out)))
        in_specs.append(pl.BlockSpec((tm, Np), lambda i: (i, 0)))
        args.append(rp)
        kernel = _linear_res_kernel

    out = pl.pallas_call(
        kernel,
        out_shape=jax.ShapeDtypeStruct((Mp, Np), out_dtype),
        grid_spec=pltpu.PrefetchScalarGridSpec(
            num_scalar_prefetch=0,
            grid=(Mp // tm,),
            in_specs=in_specs,
            out_specs=pl.BlockSpec((tm, Np), lambda i: (i, 0)),
        ),
        compiler_params=pltpu.CompilerParams(
            dimension_semantics=("parallel",),
            vmem_limit_bytes=_VMEM_LIMIT),
    )(*args)

    if (Mp, Np) != (M, n_out):
        out = out[:M, :n_out]
    return out


# ---------------------------------------------------------------------------
# Flash-style multi-head attention core: softmax(q k^T * scale) @ v.
# Blocks carry several heads at once; q/k/v are bf16, softmax math is f32.
# ---------------------------------------------------------------------------
def _make_attn_kernel(scale, kv_len, tkv, needs_mask):
    def kernel(q_ref, k_ref, v_ref, o_ref, m_sc, l_sc, acc_sc):
        ki = pl.program_id(2)

        @pl.when(ki == 0)
        def _():
            m_sc[...] = jnp.full_like(m_sc, _NEG_INF)
            l_sc[...] = jnp.zeros_like(l_sc)
            acc_sc[...] = jnp.zeros_like(acc_sc)

        q = q_ref[...]                                    # (Bh, tq, D) bf16
        k = k_ref[...]                                    # (Bh, tkv, D) bf16
        v = v_ref[...]                                    # (Bh, tkv, D) bf16

        s = jnp.einsum('bqd,bkd->bqk', q, k,
                       preferred_element_type=jnp.float32) * scale
        if needs_mask:   # only traced in when the sequence is actually padded
            kv_idx = ki * tkv + jax.lax.broadcasted_iota(jnp.int32, s.shape, 2)
            s = jnp.where(kv_idx < kv_len, s, _NEG_INF)

        m_prev = m_sc[...]                                # (Bh, tq, 1) f32
        m_new = jnp.maximum(m_prev, s.max(axis=-1, keepdims=True))
        alpha = jnp.exp(m_prev - m_new)
        p = jnp.exp(s - m_new)
        l_sc[...] = alpha * l_sc[...] + p.sum(axis=-1, keepdims=True)
        acc_sc[...] = alpha * acc_sc[...] + jnp.einsum(
            'bqk,bkd->bqd', p.astype(v.dtype), v,
            preferred_element_type=jnp.float32)
        m_sc[...] = m_new

        @pl.when(ki == pl.num_programs(2) - 1)
        def _():
            o_ref[...] = (acc_sc[...] *
                          pl.reciprocal(l_sc[...], approx=True)
                          ).astype(o_ref.dtype)

    return kernel


def mha_attention(q, k, v, scale):
    """q, k, v: (batch*heads, L, head_dim) bf16 -> softmax(q k^T * scale) @ v."""
    BH, L, D = q.shape

    t = min(256, _round_up(L, 8))          # q/kv tile length
    Lp = _round_up(L, t)
    needs_mask = Lp != L
    if needs_mask:
        pad = ((0, 0), (0, Lp - L), (0, 0))
        q, k, v = jnp.pad(q, pad), jnp.pad(k, pad), jnp.pad(v, pad)

    # Heads per block: raise per-step work, but keep >=2 blocks on the head
    # axis when possible so both v7x TensorCores get work.
    bh = 1
    for cand in (8, 4, 2):
        if BH % cand == 0:
            bh = cand
            break
    if bh > 1 and BH // bh < 2:
        bh //= 2

    out = pl.pallas_call(
        _make_attn_kernel(scale, L, t, needs_mask),
        out_shape=jax.ShapeDtypeStruct((BH, Lp, D), jnp.bfloat16),
        grid_spec=pltpu.PrefetchScalarGridSpec(
            num_scalar_prefetch=0,
            grid=(BH // bh, Lp // t, Lp // t),
            in_specs=[
                pl.BlockSpec((bh, t, D), lambda b, qi, ki: (b, qi, 0)),
                pl.BlockSpec((bh, t, D), lambda b, qi, ki: (b, ki, 0)),
                pl.BlockSpec((bh, t, D), lambda b, qi, ki: (b, ki, 0)),
            ],
            out_specs=pl.BlockSpec((bh, t, D), lambda b, qi, ki: (b, qi, 0)),
            scratch_shapes=[
                pltpu.VMEM((bh, t, 1), jnp.float32),   # running max
                pltpu.VMEM((bh, t, 1), jnp.float32),   # running denom
                pltpu.VMEM((bh, t, D), jnp.float32),   # running output
            ],
        ),
        compiler_params=pltpu.CompilerParams(
            dimension_semantics=("parallel", "parallel", "arbitrary"),
            vmem_limit_bytes=_VMEM_LIMIT),
    )(q, k, v)
    return out[:, :L, :]


# ---------------------------------------------------------------------------
# Module wrapper
# ---------------------------------------------------------------------------
class TransformerLayer:
    """JAX/Pallas equivalent of models.common.TransformerLayer (eval mode)."""

    def __init__(self, c, num_heads, *, key=None):
        assert c % num_heads == 0, "embed dim must be divisible by num_heads"
        self.c = c
        self.num_heads = num_heads
        self.head_dim = c // num_heads
        if key is None:
            key = jax.random.PRNGKey(0)
        ks = jax.random.split(key, 9)
        bound = 1.0 / math.sqrt(c)

        def u(k, shape):
            return jax.random.uniform(k, shape, jnp.float32, -bound, bound)

        # torch nn.Linear weight layout: (out_features, in_features) — kept in
        # f32 for the reference path.
        self.wq = u(ks[0], (c, c))               # self.q  (bias=False)
        self.wk = u(ks[1], (c, c))               # self.k  (bias=False)
        self.wv = u(ks[2], (c, c))               # self.v  (bias=False)
        self.in_proj_w = u(ks[3], (3 * c, c))    # MultiheadAttention in_proj
        self.in_proj_b = u(ks[4], (3 * c,))
        self.out_w = u(ks[5], (c, c))            # MultiheadAttention out_proj
        self.out_b = u(ks[6], (c,))
        self.w1 = u(ks[7], (c, c))               # fc1 (bias=False)
        self.w2 = u(ks[8], (c, c))               # fc2 (bias=False)

        # ---- one-time kernel-side weight prep (composed, transposed, padded,
        # bf16) -------------------------------------------------------------
        Kp = _round_up(c, 128)
        N3p = _round_up(3 * c, 128)
        Ncp = _round_up(c, 128)

        # x -> (q_i, k_i, v_i): compose the bias-free q/k/v projections with
        # the MHA in_proj (exact linear algebra, both are plain Linear layers).
        w_q_eff = self.in_proj_w[:c] @ self.wq
        w_k_eff = self.in_proj_w[c:2 * c] @ self.wk
        w_v_eff = self.in_proj_w[2 * c:] @ self.wv
        w_qkv = jnp.concatenate([w_q_eff, w_k_eff, w_v_eff], axis=0)  # (3c, c)
        self.wqkv_p = jnp.pad(w_qkv.T,
                              ((0, Kp - c), (0, N3p - 3 * c))).astype(jnp.bfloat16)
        self.bqkv_p = jnp.pad(self.in_proj_b.reshape(1, 3 * c),
                              ((0, 0), (0, N3p - 3 * c))).astype(jnp.float32)

        self.wout_p = jnp.pad(self.out_w.T,
                              ((0, Kp - c), (0, Ncp - c))).astype(jnp.bfloat16)
        self.bout_p = jnp.pad(self.out_b.reshape(1, c),
                              ((0, 0), (0, Ncp - c))).astype(jnp.float32)

        # fc2(fc1(x)) has no activation in between -> single composed matmul.
        w_mlp = self.w2 @ self.w1                                     # (c, c)
        self.wmlp_p = jnp.pad(w_mlp.T,
                              ((0, Kp - c), (0, Ncp - c))).astype(jnp.bfloat16)
        self.bzero_p = jnp.zeros((1, Ncp), jnp.float32)

    def __call__(self, x):
        # x: (L, N, C) — sequence-first, like torch nn.MultiheadAttention.
        L, N, C = x.shape
        H, Dh = self.num_heads, self.head_dim
        M = L * N
        x2 = x.reshape(M, C).astype(jnp.float32)

        # One fused projection: x -> [q_i | k_i | v_i] (bias from in_proj),
        # emitted in bf16 since it only feeds the attention matmuls.
        qkv = linear_fused(x2, self.wqkv_p, self.bqkv_p, 3 * C,
                           out_dtype=jnp.bfloat16)

        def to_heads(t):   # (L*N, C) -> (N*H, L, Dh), matching torch's split
            return t.reshape(L, N, H, Dh).transpose(1, 2, 0, 3).reshape(N * H, L, Dh)

        ah = mha_attention(to_heads(qkv[:, :C]),
                           to_heads(qkv[:, C:2 * C]),
                           to_heads(qkv[:, 2 * C:]),
                           1.0 / math.sqrt(Dh))
        a = ah.reshape(N, H, L, Dh).transpose(2, 0, 1, 3).reshape(M, C)

        # out_proj (+bias) with the first residual fused into the writeback.
        x1 = linear_fused(a, self.wout_p, self.bout_p, C,
                          residual=x2, out_dtype=jnp.float32)

        # Composed MLP (fc2 o fc1) with the second residual fused in.
        y = linear_fused(x1, self.wmlp_p, self.bzero_p, C,
                         residual=x1, out_dtype=jnp.float32)
        return y.reshape(L, N, C)


# ---------------------------------------------------------------------------
# Pure-JAX reference (mirrors the PyTorch forward) for the correctness check.
# ---------------------------------------------------------------------------
def _reference_forward(layer, x):
    L, N, C = x.shape
    H, Dh = layer.num_heads, layer.head_dim
    x2 = x.reshape(L * N, C)
    q = x2 @ layer.wq.T
    k = x2 @ layer.wk.T
    v = x2 @ layer.wv.T
    qi = q @ layer.in_proj_w[:C].T + layer.in_proj_b[:C]
    ki = k @ layer.in_proj_w[C:2 * C].T + layer.in_proj_b[C:2 * C]
    vi = v @ layer.in_proj_w[2 * C:].T + layer.in_proj_b[2 * C:]

    def to_heads(t):
        return t.reshape(L, N, H, Dh).transpose(1, 2, 0, 3).reshape(N * H, L, Dh)

    qh, kh, vh = to_heads(qi), to_heads(ki), to_heads(vi)
    s = jnp.einsum('bqd,bkd->bqk', qh, kh) / math.sqrt(Dh)
    p = jax.nn.softmax(s, axis=-1)
    ah = jnp.einsum('bqk,bkd->bqd', p, vh)
    a = ah.reshape(N, H, L, Dh).transpose(2, 0, 1, 3).reshape(L * N, C)
    x1 = a @ layer.out_w.T + layer.out_b + x2
    y = (x1 @ layer.w1.T) @ layer.w2.T + x1
    return y.reshape(L, N, C)


# ---------------------------------------------------------------------------
if __name__ == "__main__":
    key = jax.random.PRNGKey(0)
    kx, kp = jax.random.split(key)

    L, N, C, H = 8, 2, 32, 4          # seq, batch, channels, heads
    x = jax.random.normal(kx, (L, N, C), jnp.float32)

    layer = TransformerLayer(C, H, key=kp)
    out = jax.block_until_ready(layer(x))
    assert out.shape == (L, N, C), out.shape

    ref = _reference_forward(layer, x)
    err = float(jnp.max(jnp.abs(out - ref)))
    assert err < 2e-2, f"max abs err {err}"

    print("KERNEL_OK")
</pallas_src>

<mosaic_0001>
module attributes {stable_mosaic.version = 11 : i64} {
  func.func @_linear_kernel(%arg0: i32, %arg1: memref<16x128xf32, #tpu.memory_space<vmem>>, %arg2: memref<128x128xbf16, #tpu.memory_space<vmem>>, %arg3: memref<1x128xf32, #tpu.memory_space<vmem>>, %arg4: memref<16x128xbf16, #tpu.memory_space<vmem>>) attributes {dimension_semantics = [#tpu.dimension_semantics<parallel>], iteration_bounds = array<i64: 1>, scalar_prefetch = 0 : i64, scratch_operands = 0 : i64, tpu.core_type = #tpu.core_type<tc>, window_params = [{transform_indices = @transform_0, window_bounds = array<i64: 16, 128>}, {pipeline_mode = #tpu.pipeline_mode<synchronous>, transform_indices = @transform_1, window_bounds = array<i64: 128, 128>}, {pipeline_mode = #tpu.pipeline_mode<synchronous>, transform_indices = @transform_2, window_bounds = array<i64: 1, 128>}, {transform_indices = @transform_3, window_bounds = array<i64: 16, 128>}]} {
    %c0 = arith.constant 0 : index
    %c0_0 = arith.constant 0 : index
    %0 = vector.load %arg1[%c0, %c0_0] : memref<16x128xf32, #tpu.memory_space<vmem>>, vector<16x128xf32>
    %1 = arith.truncf %0 : vector<16x128xf32> to vector<16x128xbf16>
    %c0_1 = arith.constant 0 : index
    %c0_2 = arith.constant 0 : index
    %2 = vector.load %arg2[%c0_1, %c0_2] : memref<128x128xbf16, #tpu.memory_space<vmem>>, vector<128x128xbf16>
    %cst = arith.constant dense<0.000000e+00> : vector<16x128xf32>
    %3 = tpu.matmul %1, %2, %cst {dimension_numbers = #tpu.dot_dimension_numbers<[1], [0], [0], [1], [0, 0, 1, 1], [], []>} : vector<16x128xbf16>, vector<128x128xbf16>, vector<16x128xf32> -> vector<16x128xf32>
    %c0_3 = arith.constant 0 : index
    %c0_4 = arith.constant 0 : index
    %4 = vector.load %arg3[%c0_3, %c0_4] : memref<1x128xf32, #tpu.memory_space<vmem>>, vector<1x128xf32>
    %5 = vector.broadcast %4 : vector<1x128xf32> to vector<16x128xf32>
    %6 = arith.addf %3, %5 : vector<16x128xf32>
    %7 = arith.truncf %6 : vector<16x128xf32> to vector<16x128xbf16>
    %c0_5 = arith.constant 0 : index
    %c0_6 = arith.constant 0 : index
    %8 = vector.load %arg4[%c0_5, %c0_6] : memref<16x128xbf16, #tpu.memory_space<vmem>>, vector<16x128xbf16>
    tpu.vector_store %arg4[%c0_5, %c0_6], %7 {strides = array<i32>} : memref<16x128xbf16, #tpu.memory_space<vmem>>, vector<16x128xbf16>,
    return
  }
  func.func @transform_0(%arg0: i32) -> (i32, i32) {
    %c0_i32 = arith.constant 0 : i32
    %c0_i32_0 = arith.constant 0 : i32
    return %arg0, %c0_i32 : i32, i32
  }
  func.func @transform_1(%arg0: i32) -> (i32, i32) {
    %c0_i32 = arith.constant 0 : i32
    %c0_i32_0 = arith.constant 0 : i32
    %c0_i32_1 = arith.constant 0 : i32
    return %c0_i32, %c0_i32_0 : i32, i32
  }
  func.func @transform_2(%arg0: i32) -> (i32, i32) {
    %c0_i32 = arith.constant 0 : i32
    %c0_i32_0 = arith.constant 0 : i32
    %c0_i32_1 = arith.constant 0 : i32
    return %c0_i32, %c0_i32_0 : i32, i32
  }
  func.func @transform_3(%arg0: i32) -> (i32, i32) {
    %c0_i32 = arith.constant 0 : i32
    %c0_i32_0 = arith.constant 0 : i32
    return %arg0, %c0_i32 : i32, i32
  }
}

</mosaic_0001>

<bundles_post_ra>
// kernel: tpu_custom_call.1
= control target key start
LH: loop header
LB: loop body
LE: loop exit
PB: predicated region body
PF: predicated region fallthrough
CT: control target
= control target key end

     0   :  { %8 = vsyncpa [#allocation3], 0  ;;  %s397_s0 = inlined_call_operand.hbm [shape: f32[16,128], index: 0, kind: input, shape index: {}]   ;;  %s398_s1 = inlined_call_operand.hbm [shape: bf16[128,128], index: 1, kind: input, shape index: {}]   ;;  %s399_s2 = inlined_call_operand.vmem [shape: f32[1,128], index: 2, kind: input, shape index: {}]   ;;  %s400_s3 = inlined_call_operand.hbm [shape: bf16[16,128], index: 3, kind: output, shape index: {}]  }
   0x1   :  { %9 = vsyncpa [#allocation6], 0 }
   0x2   :  { %10 = vsyncpa [#allocation4], 0  ;;  %s323_s12 = smov [#allocation2]   ;;  %s251_s16 = scalar_lea.hbm %s397_s0, 256 }
   0x3   :  { %s16_s13 = sshll.u32 %s323_s12, 4  ;;  %p252_p0 = scmp.ne.s32.totalorder %s397_s0, %s251_s16  ;;  %s17_s13 = int_to_ptr.vmem [resolvable:$true] %s16_s13 }
   0x4   :  { %p255_p1 = scmp.lt.u32.totalorder %s251_s16, %s397_s0 }
   0x6   :  { %p257_p2 = pnand %p255_p1, %p252_p0 }
   0x8   :  { %260 = shalt.err (!%p257_p2)
}
   0x9   :  { %s261_s21 = scalar_lea.vmem %s17_s13, 256  ;;  %p266_p4 = scmp.lt.s32.totalorder %s17_s13, %s17_s13 }
   0xa   :  { %p262_p3 = scmp.ne.s32.totalorder %s17_s13, %s261_s21  ;;  %p267_p5 = scmp.lt.s32.totalorder %s261_s21, %s261_s21 }
   0xc   :  { %p268_p6 = por %p267_p5, %p266_p4 }
   0xe   :  { %p269_p7 = pnand %p268_p6, %p262_p3 }
  0x10   :  { %272 = shalt.err (!%p269_p7)
}
  0x11   :  { %s324_s22 = smov 128   ;;  %s325_s23 = smov 8  }
  0x12   :  { %22 = dma.hbm_to_vmem [thread:$0]  %s397_s0, 256, %s17_s13, [#allocation3], %s324_s22, %s324_s22, %s325_s23  }
  0x13   :  { %s326_s26 = smov [#allocation5]   ;;  %s273_s30 = scalar_lea.hbm %s398_s1, 1024 }
  0x14   :  { %s28_s27 = sshll.u32 %s326_s26, 4  ;;  %p274_p8 = scmp.ne.s32.totalorder %s398_s1, %s273_s30  ;;  %s29_s27 = int_to_ptr.vmem [resolvable:$true] %s28_s27 }
  0x15   :  { %p277_p9 = scmp.lt.u32.totalorder %s273_s30, %s398_s1 }
  0x17   :  { %p279_p10 = pnand %p277_p9, %p274_p8 }
  0x19   :  { %282 = shalt.err (!%p279_p10)
}
  0x1a   :  { %s283_s8 = scalar_lea.vmem %s29_s27, 1024  ;;  %p288_p12 = scmp.lt.s32.totalorder %s29_s27, %s29_s27 }
  0x1b   :  { %p284_p11 = scmp.ne.s32.totalorder %s29_s27, %s283_s8  ;;  %p289_p13 = scmp.lt.s32.totalorder %s283_s8, %s283_s8 }
  0x1d   :  { %p290_p0 = por %p289_p13, %p288_p12 }
  0x1f   :  { %p291_p1 = pnand %p290_p0, %p284_p11 }
  0x21   :  { %294 = shalt.err (!%p291_p1)
}
  0x22   :  { %s327_s0 = smov 64   ;;  %s328_s9 = smov 4  }
  0x23   :  { %34 = dma.hbm_to_vmem [thread:$0]  %s398_s1, 1024, %s29_s27, [#allocation6], %s327_s0, %s327_s0, %s328_s9  }
  0x24   :  { %317 = dma.done.wait [#allocation3], 256  }
  0x25   :  { %318 = vsyncadd [#allocation3], 4294967040 }
  0x26   :  { %319 = dma.done.wait [#allocation6], 1024  }
  0x27   :  { %320 = vsyncadd [#allocation6], 4294966272  ;;  %v329_v0 = vmov 0.0   ;;  %vm330_vm0 = vmmov 0   ;;  %v243_v1 = vld [vmem:[#allocation5] sm:$0xff]   ;;  %v244_v2 = vld [vmem:[#allocation5 + $0x8] sm:$0xff]  }
  0x28   :  { %214 = vmatprep.subr.bf16.mxu0 %v329_v0  ;;  %230 = vmatprep.mubr.msk.bf16.mxu0 %vm330_vm0, %v329_v0  ;;  %v245_v3 = vld [vmem:[#allocation5 + $0x10] sm:$0xff]   ;;  %v246_v4 = vld [vmem:[#allocation5 + $0x18] sm:$0xff]   ;;  %v247_v5 = vld [vmem:[#allocation5 + $0x20] sm:$0xff]   ;;  %s331_s13 = smov [#allocation7]  }
  0x29   :  { %215 = vmatpush3.bf16.msra.mxu0 %v243_v1  ;;  %v248_v6 = vld [vmem:[#allocation5 + $0x28] sm:$0xff]   ;;  %v249_v7 = vld [vmem:[#allocation5 + $0x30] sm:$0xff]   ;;  %v250_v8 = vld [vmem:[#allocation5 + $0x38] sm:$0xff]   ;;  %s174_s14 = sshll.u32 %s331_s13, 4  ;;  %s175_s14 = int_to_ptr.vmem [resolvable:$true] %s174_s14 }
  0x2a   :  { %216 = vmatprep.subr.bf16.mxu0 %v329_v0  ;;  %v44_v9 = vld [vmem:[#allocation2] sm:$0xff]  ;;  %v45_v10 = vld [vmem:[#allocation2 + $0x8] sm:$0xff]  ;;  %s295_s15 = scalar_lea.vmem %s175_s14, 128  ;;  %p300_p3 = scmp.lt.s32.totalorder %s175_s14, %s175_s14 }
  0x2b   :  { %v46_v11 = vpack.c.bf16 %v45_v10, %v44_v9  ;;  %v187_v12 = vld [vmem:[%s399_s2] ss:$0 sm:$0xff]  ;;  %p296_p2 = scmp.ne.s32.totalorder %s175_s14, %s295_s15  ;;  %p301_p4 = scmp.lt.s32.totalorder %s295_s15, %s295_s15 }
  0x2d   :  { %217 = vmatpush3.bf16.msra.mxu0 %v244_v2  ;;  %p302_p5 = por %p301_p4, %p300_p3 }
  0x2e   :  { %218 = vmatprep.subr.bf16.mxu0 %v329_v0 }
  0x2f   :  { %p303_p6 = pnand %p302_p5, %p296_p2 }
  0x31   :  { %219 = vmatpush3.bf16.msra.mxu0 %v245_v3 }
  0x32   :  { %220 = vmatprep.subr.bf16.mxu0 %v329_v0 }
  0x35   :  { %221 = vmatpush3.bf16.msra.mxu0 %v246_v4 }
  0x36   :  { %222 = vmatprep.subr.bf16.mxu0 %v329_v0 }
  0x39   :  { %223 = vmatpush3.bf16.msra.mxu0 %v247_v5 }
  0x3a   :  { %224 = vmatprep.subr.bf16.mxu0 %v329_v0 }
  0x3d   :  { %225 = vmatpush3.bf16.msra.mxu0 %v248_v6 }
  0x3e   :  { %226 = vmatprep.subr.bf16.mxu0 %v329_v0 }
  0x41   :  { %227 = vmatpush3.bf16.msra.mxu0 %v249_v7 }
  0x42   :  { %228 = vmatprep.subr.bf16.mxu0 %v329_v0 }
  0x45   :  { %229 = vmatpush3.bf16.msra.mxu0 %v250_v8 }
  0x48   :  { %231 = vmatmul.mubr.bf16.vlgmr.msra.gmra.mrb[0].mxu0 %v46_v11 }
 0x11b   :  { %v152_v13 = vpop.f32.mrb[0].mxu0 }
 0x11c   :  { %v232_v14 = vpop.f32.mrb[1].mxu0  ;;  %v153_v16 = vadd.f32 %v187_v12, %v152_v13 }
 0x11d   :  { %v155_v15 = vpop.f32.mrb[2].mxu0 }
 0x11e   :  { %v156_v17 = vadd.f32 %v187_v12, %v155_v15  ;;  %v233_v18 = vpop.f32.mrb[3].mxu0 }
 0x120   :  { %v203_v19 = vpack.c.bf16 %v156_v17, %v153_v16 }
 0x122   :  { %204 = vst [vmem:[#allocation7] sm:$0xff] %v203_v19  }
 0x123   :  { %306 = shalt.err (!%p303_p6)
}
 0x124   :  { %s307_s17 = scalar_lea.hbm %s400_s3, 128 }
 0x125   :  { %p308_p7 = scmp.ne.s32.totalorder %s400_s3, %s307_s17  ;;  %p311_p8 = scmp.lt.u32.totalorder %s307_s17, %s400_s3 }
 0x127   :  { %p313_p9 = pnand %p311_p8, %p308_p7 }
 0x129   :  { %316 = shalt.err (!%p313_p9)
}
 0x12a   :  { %180 = dma.vmem_to_hbm [thread:$0]  %s175_s14, 128, %s400_s3, [#allocation4], %s327_s0, %s327_s0, %s328_s9  }
 0x12b   :  { %321 = dma.done.wait [#allocation4], 128  }
 0x12c   :  { %322 = vsyncadd [#allocation4], 4294967168 }
 0x12d   :  { %184 = vsyncpa [#allocation3], 1 }
 0x12e   :  { %185 = vsyncpa [#allocation6], 1 }
 0x12f   :  { %186 = vsyncpa [#allocation4], 1 }

</bundles_post_ra>
